<compile_context>
chip_gen: v5e
topology: v5e:2x2
jax: 0.10.0
libtpu: 0.0.40
codegen_flags: <defaults>
</compile_context>

<pallas_src>
import jax
import jax.numpy as jnp
from jax.experimental import pallas as pl
from jax.experimental.pallas import tpu as pltpu

POOL_K = 7          # nn.MaxPool2d(7, stride=1)
LANES = 128


def _round_up(n, m):
    return ((n + m - 1) // m) * m


def _pick_batch_tile(B, target=16):
    """Batch rows per grid step.

    Multiple of 8 (full-sublane, unmasked stores) when B allows, and >= 2 grid
    steps so v7x's two TensorCores both get work on this memory-bound kernel.
    On v5e/v6e (128 MiB VMEM) `target` can be raised to 64-128; the default 16
    also fits v7x's 64 MiB VMEM with plenty of headroom at ResNet scale (C=2048).
    """
    if B < 16:
        return B                                   # one step; block == full batch dim
    bt = min(_round_up(target, 8), (B // 2) // 8 * 8)
    return max(bt, 8)


def fused_classifier_kernel(x_ref, w_ref, b_ref, logits_ref, gmp_ref):
    """GAP + fused (classifier, classifier2) matmul + 7x7 global max; one x read.

    x_ref:      (Bt, C, H*W)   Bt batch rows, native NCHW layout (H*W on lanes)
    w_ref:      (C, NC_pad)    [classifier | classifier2] weights, pre-transposed
    b_ref:      (1, NC_pad)    concatenated biases (zero-padded)
    logits_ref: (Bt, NC_pad)   combined logits (lane-dense, padded class dim)
    gmp_ref:    (Bt, C)        global-max-pooled features (== gmp(...).flatten(1))
    """
    x = x_ref[...].astype(jnp.float32)               # (Bt, C, HW); f32 math (v5e-safe)
    pooled = jnp.mean(x, axis=2)                     # (Bt, C) == AdaptiveAvgPool2d(1)
    gmax = jnp.max(x, axis=2)                        # (Bt, C) == MaxPool2d(7,1) on 7x7

    logits = jnp.dot(pooled, w_ref[...],
                     preferred_element_type=jnp.float32) + b_ref[...]
    logits_ref[...] = logits
    gmp_ref[...] = gmax.astype(gmp_ref.dtype)


def classifier_forward(x, w_cls, b_cls, w_cls2, b_cls2, *, batch_tile=16):
    """Pallas port of Classifier.forward (inference path)."""
    B, C, H, W = x.shape
    num_classes = w_cls.shape[0]

    if H != POOL_K or W != POOL_K:
        # TODO(synk): general H,W > 7 windowed max-pool (separable running max) not
        # implemented; the canonical ResNet final feature map is 7x7.
        raise NotImplementedError("MaxPool2d(7, stride=1) path requires a 7x7 feature map")

    # TODO(synk): ADR.Intra_ADR is not defined in the provided source; it is treated
    # as an identity pass-through (branch_out = branch2 = x_adr = x).
    branch_out = x
    fm = x

    HW = H * W
    NC2 = 2 * num_classes
    NC_pad = _round_up(NC2, LANES)

    Bt = _pick_batch_tile(B, batch_tile)
    G = pl.cdiv(B, Bt)                               # ragged last block handled by Pallas

    # Free reshape only -- x stays in its native layout in HBM (no transpose/pad pass).
    x_r = x.reshape(B, C, HW)

    # Concatenate the two linear heads, pre-transpose to (C, NC_pad):
    # columns [0:NC) -> classifier (x_ce), [NC:2NC) -> classifier2 (x_adr).
    w_cat = jnp.concatenate([w_cls, w_cls2], axis=0).astype(jnp.float32)     # (2NC, C)
    w_t = jnp.zeros((C, NC_pad), jnp.float32).at[:, :NC2].set(w_cat.T)
    b_cat = jnp.zeros((1, NC_pad), jnp.float32).at[0, :NC2].set(
        jnp.concatenate([b_cls, b_cls2]).astype(jnp.float32))

    # Right-size VMEM: double-buffered x tile + (resident, double-buffered) weights/bias
    # + output blocks + slack.  Cap at 32 MiB so it is safe on v7x's 64 MiB VMEM.
    itemsize = jnp.dtype(x.dtype).itemsize
    x_bytes = Bt * C * HW * itemsize
    w_bytes = C * NC_pad * 4 + NC_pad * 4
    out_bytes = Bt * NC_pad * 4 + Bt * C * itemsize
    vmem_need = 2 * (x_bytes + w_bytes + out_bytes) + (2 << 20)
    vmem_limit = int(min(32 << 20, max(4 << 20, vmem_need)))

    logits_pad, gmp_out = pl.pallas_call(
        fused_classifier_kernel,
        out_shape=(
            jax.ShapeDtypeStruct((B, NC_pad), jnp.float32),
            jax.ShapeDtypeStruct((B, C), x.dtype),
        ),
        grid=(G,),
        in_specs=[
            pl.BlockSpec((Bt, C, HW), lambda b: (b, 0, 0)),
            pl.BlockSpec((C, NC_pad), lambda b: (0, 0)),   # weights stay resident
            pl.BlockSpec((1, NC_pad), lambda b: (0, 0)),   # bias stays resident
        ],
        out_specs=(
            pl.BlockSpec((Bt, NC_pad), lambda b: (b, 0)),
            pl.BlockSpec((Bt, C), lambda b: (b, 0)),
        ),
        compiler_params=pltpu.CompilerParams(
            dimension_semantics=("parallel",),
            vmem_limit_bytes=vmem_limit,
        ),
    )(x_r, w_t, b_cat)

    x_ce_out = logits_pad[:, :num_classes]               # classifier(GAP(x))
    x_adr_out = logits_pad[:, num_classes:NC2]            # classifier2(GAP(x_adr))
    b2_out = gmp_out                                       # (B, C) == flatten(1) of gmp

    return ([x_adr_out, x_ce_out], [branch_out, b2_out], fm)


if __name__ == "__main__":
    # Small shapes consistent with the module: `outp` channels, 7x7 feature map
    # (required by MaxPool2d(7, stride=1)), small class count.
    B, C, H, W = 2, 32, 7, 7
    num_classes = 10

    key = jax.random.PRNGKey(0)
    kx, kw1, kb1, kw2, kb2 = jax.random.split(key, 5)

    x = jax.random.normal(kx, (B, C, H, W), dtype=jnp.float32)

    # reset_parameters(): nn.Linear weight/bias ~ N(0, 0.01)
    w_cls = 0.01 * jax.random.normal(kw1, (num_classes, C), dtype=jnp.float32)
    b_cls = 0.01 * jax.random.normal(kb1, (num_classes,), dtype=jnp.float32)
    w_cls2 = 0.01 * jax.random.normal(kw2, (num_classes, C), dtype=jnp.float32)
    b_cls2 = 0.01 * jax.random.normal(kb2, (num_classes,), dtype=jnp.float32)

    (logits, branches, fm) = classifier_forward(x, w_cls, b_cls, w_cls2, b_cls2)
    jax.block_until_ready((logits, branches, fm))

    # Pure-JAX reference check of the Pallas hot paths.
    pooled_ref = jnp.mean(x, axis=(2, 3))
    ce_ref = pooled_ref @ w_cls.T + b_cls
    adr_ref = pooled_ref @ w_cls2.T + b_cls2
    gmp_ref = jnp.max(x, axis=(2, 3))   # 7x7 pool over 7x7 map == global max
    assert jnp.allclose(logits[1], ce_ref, atol=1e-4), "classifier mismatch"
    assert jnp.allclose(logits[0], adr_ref, atol=1e-4), "classifier2 mismatch"
    assert jnp.allclose(branches[1], gmp_ref, atol=1e-5), "gmp mismatch"
    assert branches[1].shape == (B, C)
    assert fm.shape == (B, C, H, W)

    print("KERNEL_OK")
</pallas_src>

<mosaic_0001>
module attributes {stable_mosaic.version = 11 : i64} {
  func.func @fused_classifier_kernel(%arg0: i32, %arg1: memref<2x32x49xf32, #tpu.memory_space<vmem>>, %arg2: memref<32x128xf32, #tpu.memory_space<vmem>>, %arg3: memref<1x128xf32, #tpu.memory_space<vmem>>, %arg4: memref<2x128xf32, #tpu.memory_space<vmem>>, %arg5: memref<2x32xf32, #tpu.memory_space<vmem>>) attributes {dimension_semantics = [#tpu.dimension_semantics<parallel>], iteration_bounds = array<i64: 1>, scalar_prefetch = 0 : i64, scratch_operands = 0 : i64, tpu.core_type = #tpu.core_type<tc>, window_params = [{transform_indices = @transform_0, window_bounds = array<i64: 2, 32, 49>}, {pipeline_mode = #tpu.pipeline_mode<synchronous>, transform_indices = @transform_1, window_bounds = array<i64: 32, 128>}, {pipeline_mode = #tpu.pipeline_mode<synchronous>, transform_indices = @transform_2, window_bounds = array<i64: 1, 128>}, {transform_indices = @transform_3, window_bounds = array<i64: 2, 128>}, {transform_indices = @transform_4, window_bounds = array<i64: 2, 32>}]} {
    %c0 = arith.constant 0 : index
    %c0_0 = arith.constant 0 : index
    %c0_1 = arith.constant 0 : index
    %0 = vector.load %arg1[%c0, %c0_0, %c0_1] : memref<2x32x49xf32, #tpu.memory_space<vmem>>, vector<2x32x49xf32>
    %cst = arith.constant dense<0.000000e+00> : vector<2x32xf32>
    %1 = vector.multi_reduction <add>, %0, %cst [2] : vector<2x32x49xf32> to vector<2x32xf32>
    %cst_2 = arith.constant 4.900000e+01 : f32
    %2 = vector.broadcast %cst_2 : f32 to vector<2x32xf32>
    %3 = arith.divf %1, %2 : vector<2x32xf32>
    %cst_3 = arith.constant dense<0xFF800000> : vector<2x32xf32>
    %4 = vector.multi_reduction <maximumf>, %0, %cst_3 [2] : vector<2x32x49xf32> to vector<2x32xf32>
    %c0_4 = arith.constant 0 : index
    %c0_5 = arith.constant 0 : index
    %5 = vector.load %arg2[%c0_4, %c0_5] : memref<32x128xf32, #tpu.memory_space<vmem>>, vector<32x128xf32>
    %cst_6 = arith.constant dense<0.000000e+00> : vector<2x128xf32>
    %6 = tpu.matmul %3, %5, %cst_6 {dimension_numbers = #tpu.dot_dimension_numbers<[1], [0], [0], [1], [0, 0, 1, 1], [], []>} : vector<2x32xf32>, vector<32x128xf32>, vector<2x128xf32> -> vector<2x128xf32>
    %c0_7 = arith.constant 0 : index
    %c0_8 = arith.constant 0 : index
    %7 = vector.load %arg3[%c0_7, %c0_8] : memref<1x128xf32, #tpu.memory_space<vmem>>, vector<1x128xf32>
    %8 = vector.broadcast %7 : vector<1x128xf32> to vector<2x128xf32>
    %9 = arith.addf %6, %8 : vector<2x128xf32>
    %c0_9 = arith.constant 0 : index
    %c0_10 = arith.constant 0 : index
    %10 = vector.load %arg4[%c0_9, %c0_10] : memref<2x128xf32, #tpu.memory_space<vmem>>, vector<2x128xf32>
    tpu.vector_store %arg4[%c0_9, %c0_10], %9 {strides = array<i32>} : memref<2x128xf32, #tpu.memory_space<vmem>>, vector<2x128xf32>,
    %c0_11 = arith.constant 0 : index
    %c0_12 = arith.constant 0 : index
    %11 = vector.load %arg5[%c0_11, %c0_12] : memref<2x32xf32, #tpu.memory_space<vmem>>, vector<2x32xf32>
    tpu.vector_store %arg5[%c0_11, %c0_12], %4 {strides = array<i32>} : memref<2x32xf32, #tpu.memory_space<vmem>>, vector<2x32xf32>,
    return
  }
  func.func @transform_0(%arg0: i32) -> (i32, i32, i32) {
    %c0_i32 = arith.constant 0 : i32
    %c0_i32_0 = arith.constant 0 : i32
    %c0_i32_1 = arith.constant 0 : i32
    return %arg0, %c0_i32, %c0_i32_0 : i32, i32, i32
  }
  func.func @transform_1(%arg0: i32) -> (i32, i32) {
    %c0_i32 = arith.constant 0 : i32
    %c0_i32_0 = arith.constant 0 : i32
    %c0_i32_1 = arith.constant 0 : i32
    return %c0_i32, %c0_i32_0 : i32, i32
  }
  func.func @transform_2(%arg0: i32) -> (i32, i32) {
    %c0_i32 = arith.constant 0 : i32
    %c0_i32_0 = arith.constant 0 : i32
    %c0_i32_1 = arith.constant 0 : i32
    return %c0_i32, %c0_i32_0 : i32, i32
  }
  func.func @transform_3(%arg0: i32) -> (i32, i32) {
    %c0_i32 = arith.constant 0 : i32
    %c0_i32_0 = arith.constant 0 : i32
    return %arg0, %c0_i32 : i32, i32
  }
  func.func @transform_4(%arg0: i32) -> (i32, i32) {
    %c0_i32 = arith.constant 0 : i32
    %c0_i32_0 = arith.constant 0 : i32
    return %arg0, %c0_i32 : i32, i32
  }
}

</mosaic_0001>

<bundles_post_ra>
// kernel: tpu_custom_call.1
= control target key start
LH: loop header
LB: loop body
LE: loop exit
PB: predicated region body
PF: predicated region fallthrough
CT: control target
= control target key end

     0   :  { %10 = vsyncpa [#allocation3], 0  ;;  %s438_s0 = inlined_call_operand.hbm [shape: f32[2,32,49], index: 0, kind: input, shape index: {}]   ;;  %s439_s1 = inlined_call_operand.hbm [shape: f32[32,128], index: 1, kind: input, shape index: {}]   ;;  %s440_s2 = inlined_call_operand.vmem [shape: f32[1,128], index: 2, kind: input, shape index: {}]   ;;  %s441_s3 = inlined_call_operand.hbm [shape: f32[2,128], index: 3, kind: output, shape index: {0}]   ;;  %s442_s4 = inlined_call_operand.hbm [shape: f32[2,32], index: 4, kind: output, shape index: {1}]  }
   0x1   :  { %11 = vsyncpa [#allocation6], 0 }
   0x2   :  { %12 = vsyncpa [#allocation4], 0 }
   0x3   :  { %13 = vsyncpa [#allocation9], 0  ;;  %s18_s17 = sshll.u32 %s438_s0, 4  ;;  %s361_s18 = smov [#allocation2]   ;;  %s19_s17 = int_to_ptr.hbm [resolvable:$true] %s18_s17 }
   0x4   :  { %s20_s19 = sshll.u32 %s361_s18, 4  ;;  %s31_s22 = sshll.u32 %s439_s1, 4  ;;  %s21_s19 = int_to_ptr.vmem [resolvable:$true] %s20_s19  ;;  %s32_s22 = int_to_ptr.hbm [resolvable:$true] %s31_s22 }
   0x5   :  { %s362_s23 = smov 128   ;;  %s363_s24 = smov 8  }
   0x6   :  { %26 = dma.hbm_to_vmem [thread:$0]  %s19_s17, 1024, %s21_s19, [#allocation3], %s362_s23, %s362_s23, %s363_s24  }
   0x7   :  { %s364_s25 = smov [#allocation5]  }
   0x8   :  { %s33_s26 = sshll.u32 %s364_s25, 4  ;;  %s34_s26 = int_to_ptr.vmem [resolvable:$true] %s33_s26 }
   0x9   :  { %39 = dma.hbm_to_vmem [thread:$0]  %s32_s22, 512, %s34_s26, [#allocation6], %s362_s23, %s362_s23, %s363_s24  }
   0xa   :  { %353 = dma.done.wait [#allocation3], 1024  }
   0xb   :  { %354 = vsyncadd [#allocation3], 4294966272 }
   0xc   :  { %355 = dma.done.wait [#allocation6], 512  }
   0xd   :  { %356 = vsyncadd [#allocation6], 4294966784  ;;  %vm58_vm0 = vcmask 400384   ;;  %v54_v0 = vld [vmem:[#allocation2 + $0x20] sm:$0xff]  ;;  %v52_v2 = vld [vmem:[#allocation2 + $0x10] sm:$0xff]  ;;  %v365_v23 = vmov 49.0   ;;  %v138_v36 = vlaneseq }
   0xe   :  { %v50_v1 = vld [vmem:[#allocation2] sm:$0xff]  ;;  %v71_v3 = vsel %vm58_vm0, %v54_v0, 0.0  ;;  %v65_v5 = vsel %vm58_vm0, %v52_v2, 0.0  ;;  %v55_v6 = vld [vmem:[#allocation2 + $0x28] sm:$0xff]  ;;  %v56_v8 = vld [vmem:[#allocation2 + $0x30] sm:$0xff]  ;;  %v110_v18 = vsel %vm58_vm0, %v54_v0, -inf  ;;  %255 = vrcp.f32 %v365_v23 }
   0xf   :  { %v59_v4 = vsel %vm58_vm0, %v50_v1, 0.0  ;;  %72 = vadd.xlane.f32.xlu1 %v71_v3  ;;  %66 = vadd.xlane.f32.xlu2 %v65_v5  ;;  %v51_v7 = vld [vmem:[#allocation2 + $0x8] sm:$0xff]  ;;  %v74_v9 = vsel %vm58_vm0, %v55_v6, 0.0  ;;  %v77_v11 = vsel %vm58_vm0, %v56_v8, 0.0  ;;  %v57_v12 = vld [vmem:[#allocation2 + $0x38] sm:$0xff]  ;;  %v98_v16 = vsel %vm58_vm0, %v50_v1, -inf }
  0x10   :  { %60 = vadd.xlane.f32.xlu0 %v59_v4  ;;  %v62_v10 = vsel %vm58_vm0, %v51_v7, 0.0  ;;  %v53_v13 = vld [vmem:[#allocation2 + $0x18] sm:$0xff]  ;;  %v80_v14 = vsel %vm58_vm0, %v57_v12, 0.0  ;;  %v101_v17 = vsel %vm58_vm0, %v51_v7, -inf  ;;  %v113_v19 = vsel %vm58_vm0, %v55_v6, -inf  ;;  %v124_v26 = vld [vmem:[#allocation5 + $0x10] sm:$0xff] }
  0x11   :  { %v68_v15 = vsel %vm58_vm0, %v53_v13, 0.0  ;;  %v104_v20 = vsel %vm58_vm0, %v52_v2, -inf  ;;  %v125_v21 = vld [vmem:[#allocation5 + $0x18] sm:$0xff]  ;;  %v116_v22 = vsel %vm58_vm0, %v56_v8, -inf  ;;  %v107_v24 = vsel %vm58_vm0, %v53_v13, -inf  ;;  %v123_v27 = vld [vmem:[#allocation5 + $0x8] sm:$0xff] }
  0x12   :  { %177 = vmatpush.msra.mxu0 %v125_v21  ;;  %v119_v25 = vsel %vm58_vm0, %v57_v12, -inf  ;;  %v122_v28 = vld [vmem:[#allocation5] sm:$0xff]  ;;  %v139_v38 = vand.u32 127, %v138_v36  ;;  %vm143_vm2 = vcmask 130112   ;;  %vm147_vm3 = vcmask 195712   ;;  %s366_s0 = smov [#allocation8]  }
  0x13   :  { %vm151_vm4 = vcmask 261312   ;;  %vm160_vm5 = vcmask 1041409   ;;  %vm162_vm6 = vcmask 261120   ;;  %s228_s1 = sshll.u32 %s366_s0, 4  ;;  %s230_s29 = sshll.u32 %s442_s4, 4  ;;  %vm210_vm7 = vcmask 254976   ;;  %s229_s1 = int_to_ptr.vmem [resolvable:$true] %s228_s1  ;;  %s231_s29 = int_to_ptr.hbm [resolvable:$true] %s230_s29 }
  0x14   :  { %178 = vmatpush.msra.mxu0 %v124_v26  ;;  %v256_v29 = vpop.eup %255  ;;  %v141_v42 = vadd.s32 4294967288, %v139_v38  ;;  %v145_v51 = vadd.s32 4294967280, %v139_v38  ;;  %v149_v55 = vadd.s32 4294967272, %v139_v38  ;;  %s367_s6 = smov [#allocation7]   ;;  %s219_s9 = sshll.u32 %s441_s3, 4  ;;  %s220_s9 = int_to_ptr.hbm [resolvable:$true] %s219_s9 }
  0x15   :  { %v84_v30 = vmul.f32 49.0, %v256_v29  ;;  %vm88_vm1 = vweird.f32 %v256_v29  ;;  %s217_s7 = sshll.u32 %s367_s6, 4  ;;  %s218_s7 = int_to_ptr.vmem [resolvable:$true] %s217_s7 }
  0x16   :  { %179 = vmatpush.msra.mxu0 %v123_v27 }
  0x17   :  { %75 = vadd.xlane.f32.xlu1 %v74_v9  ;;  %78 = vadd.xlane.f32.xlu2 %v77_v11  ;;  %v85_v31 = vsub.f32 1.0, %v84_v30  ;;  %v254_v30 = vld [vmem:[%s440_s2] ss:$0 sm:$0xff] }
  0x18   :  { %63 = vadd.xlane.f32.xlu0 %v62_v10  ;;  %180 = vmatpush.msra.mxu0 %v122_v28 }
  0x19   :  { %v86_v32 = vmul.f32 %v256_v29, %v85_v31 }
  0x1b   :  { %v87_v37 = vadd.f32 %v256_v29, %v86_v32 }
  0x1d   :  { %v89_v39 = vsel %vm88_vm1, %v256_v29, %v87_v37 }
  0x1f   :  { %81 = vadd.xlane.f32.xlu1 %v80_v14  ;;  %99 = vmax.xlane.f32.xlu2 %v98_v16 }
  0x20   :  { %69 = vadd.xlane.f32.xlu0 %v68_v15 }
  0x27   :  { %111 = vmax.xlane.f32.xlu1 %v110_v18  ;;  %114 = vmax.xlane.f32.xlu2 %v113_v19 }
  0x28   :  { %102 = vmax.xlane.f32.xlu0 %v101_v17 }
  0x2f   :  { %117 = vmax.xlane.f32.xlu1 %v116_v22  ;;  %108 = vmax.xlane.f32.xlu2 %v107_v24 }
  0x30   :  { %105 = vmax.xlane.f32.xlu0 %v104_v20 }
  0x38   :  { %120 = vmax.xlane.f32.xlu0 %v119_v25 }
  0x82   :  { %v73_v33 = vpop.xlane.xlu1 %72  ;;  %v67_v35 = vpop.xlane.xlu2 %66 }
  0x83   :  { %v61_v34 = vpop.xlane.xlu0 %60  ;;  %v94_v46 = vmul.f32 %v89_v39, %v73_v33  ;;  %v92_v52 = vmul.f32 %v89_v39, %v67_v35 }
  0x84   :  { %v90_v47 = vmul.f32 %v89_v39, %v61_v34 }
  0x85   :  { %v153_v53 = vperm.slane %v94_v46, %v139_v38  ;;  %v146_v63 = vperm.slane %v92_v52, %v145_v51 }
  0x86   :  { %v140_v54 = vperm.slane %v90_v47, %v139_v38 }
  0x8a   :  { %v76_v40 = vpop.xlane.xlu1 %75  ;;  %v79_v45 = vpop.xlane.xlu2 %78 }
  0x8b   :  { %v64_v41 = vpop.xlane.xlu0 %63  ;;  %v95_v43 = vmul.f32 %v89_v39, %v76_v40  ;;  %v96_v48 = vmul.f32 %v89_v39, %v79_v45 }
  0x8c   :  { %v91_v44 = vmul.f32 %v89_v39, %v64_v41 }
  0x8d   :  { %v154_v49 = vperm.slane %v95_v43, %v141_v42  ;;  %v156_v56 = vperm.slane %v96_v48, %v145_v51 }
  0x8e   :  { %v142_v50 = vperm.slane %v91_v44, %v141_v42 }
  0x8f   :  { %v155_v59 = vsel %vm143_vm2, %v154_v49, %v153_v53 }
  0x90   :  { %v144_v60 = vsel %vm143_vm2, %v142_v50, %v140_v54  ;;  %v157_v3 = vsel %vm147_vm3, %v156_v56, %v155_v59 }
  0x91   :  { %v148_v2 = vsel %vm147_vm3, %v146_v63, %v144_v60 }
  0x92   :  { %v82_v57 = vpop.xlane.xlu1 %81  ;;  %v100_v7 = vpop.xlane.xlu2 %99 }
  0x93   :  { %v70_v58 = vpop.xlane.xlu0 %69  ;;  %v97_v61 = vmul.f32 %v89_v39, %v82_v57  ;;  %v194_v12 = vperm.slane %v100_v7, %v139_v38 }
  0x94   :  { %v93_v62 = vmul.f32 %v89_v39, %v70_v58 }
  0x95   :  { %v158_v0 = vperm.slane %v97_v61, %v149_v55 }
  0x96   :  { %v150_v1 = vperm.slane %v93_v62, %v149_v55 }
  0x97   :  { %v159_v5 = vsel %vm151_vm4, %v158_v0, %v157_v3 }
  0x98   :  { %v152_v4 = vsel %vm151_vm4, %v150_v1, %v148_v2 }
  0x99   :  { %v161_v6 = vsel %vm160_vm5, %v159_v5, %v152_v4 }
  0x9a   :  { %246 = vmatmul.msk.f32.vlgmr.msra.gmra.mxu0 %vm162_vm6, %v161_v6  ;;  %v112_v9 = vpop.xlane.xlu1 %111  ;;  %v115_v10 = vpop.xlane.xlu2 %114 }
  0x9b   :  { %v103_v8 = vpop.xlane.xlu0 %102  ;;  %v201_v14 = vperm.slane %v112_v9, %v139_v38  ;;  %v202_v15 = vperm.slane %v115_v10, %v141_v42 }
  0x9c   :  { %v195_v13 = vperm.slane %v103_v8, %v141_v42 }
  0x9d   :  { %v203_v18 = vsel %vm143_vm2, %v202_v15, %v201_v14 }
  0x9e   :  { %v196_v17 = vsel %vm143_vm2, %v195_v13, %v194_v12 }
  0xa2   :  { %v118_v19 = vpop.xlane.xlu1 %117  ;;  %v109_v23 = vpop.xlane.xlu2 %108 }
  0xa3   :  { %v106_v11 = vpop.xlane.xlu0 %105  ;;  %v204_v20 = vperm.slane %v118_v19, %v145_v51  ;;  %v199_v25 = vperm.slane %v109_v23, %v149_v55 }
  0xa4   :  { %v197_v16 = vperm.slane %v106_v11, %v145_v51 }
  0xa5   :  { %v205_v22 = vsel %vm147_vm3, %v204_v20, %v203_v18 }
  0xa6   :  { %v198_v21 = vsel %vm147_vm3, %v197_v16, %v196_v17 }
  0xa7   :  { %v200_v27 = vsel %vm151_vm4, %v199_v25, %v198_v21 }
  0xab   :  { %v121_v24 = vpop.xlane.xlu0 %120 }
  0xac   :  { %v206_v26 = vperm.slane %v121_v24, %v149_v55 }
  0xae   :  { %v207_v28 = vsel %vm151_vm4, %v206_v26, %v205_v22 }
  0xaf   :  { %v208_v29 = vsel %vm160_vm5, %v207_v28, %v200_v27 }
  0xb0   :  { %211 = vst.msk [vmem:[#allocation8] sm:$0x3] %vm210_vm7, %v208_v29 }
  0xb1   :  { %233 = dma.vmem_to_hbm [thread:$0]  %s229_s1, 32, %s231_s29, [#allocation9]  }
 0x117   :  { %v182_v31 = vpop.f32.mrf.mxu0 }
 0x118   :  { %v183_v32 = vadd.f32 %v254_v30, %v182_v31 }
 0x11a   :  { %185 = vst [vmem:[#allocation7] sm:$0x3] %v183_v32 }
 0x11b   :  { %222 = dma.vmem_to_hbm [thread:$0]  %s218_s7, 32, %s220_s9, [#allocation4]  }
 0x11c   :  { %357 = dma.done.wait [#allocation4], 32  }
 0x11d   :  { %358 = vsyncadd [#allocation4], 4294967264 }
 0x11e   :  { %359 = dma.done.wait [#allocation9], 32  }
 0x11f   :  { %360 = vsyncadd [#allocation9], 4294967264 }
 0x120   :  { %242 = vsyncpa [#allocation3], 1 }
 0x121   :  { %243 = vsyncpa [#allocation6], 1 }
 0x122   :  { %244 = vsyncpa [#allocation4], 1 }
 0x123   :  { %245 = vsyncpa [#allocation9], 1 }

</bundles_post_ra>
